<compile_context>
chip_gen: v7x
topology: tpu7x:2x2x1
jax: 0.10.0
libtpu: 0.0.40
codegen_flags: <defaults>
</compile_context>

<pallas_src>
import numpy as np
import jax
import jax.numpy as jnp
from jax.experimental import pallas as pl
from jax.experimental.pallas import tpu as pltpu

_GRAY_W = (0.299, 0.587, 0.114)


def _round_up(x, m):
    return (x + m - 1) // m * m


def decom_loss_pallas(low_img, high_img, r_low, r_high, i_low, i_high):
    B, C, H, W = low_img.shape
    assert C == 3 and i_low.shape == (B, 1, H, W) and i_high.shape == (B, 1, H, W)

    # Lane-dense padded spatial extent (sublane multiple of 8, lane multiple
    # of 128).  Also required for pltpu.roll's aligned-shape constraint.
    Hp = _round_up(H, 8)
    Wp = _round_up(W, 128)

    # Merge six input streams into two contiguous per-step DMAs.
    imgs = jnp.concatenate([low_img, high_img, r_low, r_high], axis=1)   # (B,12,H,W)
    illum = jnp.concatenate([i_low, i_high], axis=1)                     # (B,2,H,W)
    if Hp != H or Wp != W:
        pad = ((0, 0), (0, 0), (0, Hp - H), (0, Wp - W))
        imgs = jnp.pad(imgs, pad)
        illum = jnp.pad(illum, pad)

    # Batch elements per grid step: big enough to amortize per-step overhead,
    # small enough to keep >= 2 grid steps (megacore) and a modest VMEM block.
    plane_bytes = 14 * Hp * Wp * 4
    bt = 1
    for d in range(1, B + 1):
        if B % d == 0 and d * plane_bytes <= (2 << 20) and (B // d >= 2 or B == 1):
            bt = d
    nsteps = B // bt

    inv_n3 = 1.0 / float(B * 3 * H * W)   # 3-channel mean denominator (recon/ir/L1)
    w_n1 = 0.1 / float(B * 1 * H * W)     # 0.1 weight folded into the 1-channel mean

    def kernel(imgs_ref, illum_ref, out_ref):
        # The trailing true column/row of each forward difference is zero
        # (matches the zero-padded reference); the same masks also zero the
        # padded region and the wrap-around column/row introduced by roll.
        col = jax.lax.broadcasted_iota(jnp.int32, (Hp, Wp), 1)
        row = jax.lax.broadcasted_iota(jnp.int32, (Hp, Wp), 0)
        mask_x = col < (W - 1)
        mask_y = row < (H - 1)

        def make_grad(mask, axis, shift):
            def g(m):
                return jnp.abs(jnp.where(mask, pltpu.roll(m, shift, axis) - m, 0.0))
            return g

        grad_fns = (make_grad(mask_x, 1, Wp - 1),   # x: m[:, j+1] - m[:, j]
                    make_grad(mask_y, 0, Hp - 1))   # y: m[i+1, :] - m[i, :]

        s3 = jnp.float32(0.0)
        s1 = jnp.float32(0.0)
        for bi in range(bt):
            lo = imgs_ref[bi, 0:3]       # (3, Hp, Wp)
            hi = imgs_ref[bi, 3:6]
            rl = imgs_ref[bi, 6:9]
            rh = imgs_ref[bi, 9:12]
            il = illum_ref[bi, 0]        # (Hp, Wp), broadcasts over channel dim
            ih = illum_ref[bi, 1]

            # recon / ir / L1 share the 3-channel mean denominator:
            # weight-combine elementwise and reduce once.
            e = (jnp.abs(lo - il * rl) + jnp.abs(hi - ih * rh)            # L_recon
                 + 0.01 * jnp.abs(rl - rh)                                # L_ir
                 + 0.001 * (jnp.abs(rh * il - lo) + jnp.abs(rl * ih - hi)))  # L1
            s3 = s3 + jnp.sum(e)

            gray_low = (_GRAY_W[0] * lo[0] + _GRAY_W[1] * lo[1] + _GRAY_W[2] * lo[2])
            gray_high = (_GRAY_W[0] * hi[0] + _GRAY_W[1] * hi[1] + _GRAY_W[2] * hi[2])

            # x pass then y pass: only one direction's gradient maps live at a
            # time.  mi and mc share the 0.1 weight and the 1-channel mean.
            for g in grad_fns:
                gl = g(il)
                gh = g(ih)
                gs = gl + gh
                mi = gs * jnp.exp(-10.0 * gs)
                # Outer abs dropped: numerator >= 0, denominator > 0.
                # TODO(synk): pl.reciprocal(approx=True) moves this onto the EUP
                # slot; kept exact here to preserve the 1e-4 end-to-end tolerance.
                mc = (gl * pl.reciprocal(jnp.maximum(g(gray_low), 0.01), approx=False)
                      + gh * pl.reciprocal(jnp.maximum(g(gray_high), 0.01), approx=False))
                s1 = s1 + jnp.sum(mi + mc)

        contrib = s3 * inv_n3 + s1 * w_n1
        out_ref[...] = jnp.zeros_like(out_ref) + contrib

    imgs_spec = pl.BlockSpec((bt, 12, Hp, Wp), lambda b: (b, 0, 0, 0))
    illum_spec = pl.BlockSpec((bt, 2, Hp, Wp), lambda b: (b, 0, 0, 0))

    # VMEM budget: double-buffered input block + live (Hp,Wp) temporaries for
    # one batch element, capped below the physical per-core VMEM.
    try:
        vmem_cap = int(getattr(pltpu.get_tpu_info(), "vmem_capacity_bytes"))
    except Exception:
        vmem_cap = 64 << 20   # conservative (v7x) fallback
    step_bytes = bt * 14 * Hp * Wp * 4
    live_bytes = 28 * Hp * Wp * 4
    vmem_limit = int(min(int(0.75 * vmem_cap),
                         max(32 << 20, 2 * step_bytes + live_bytes + (4 << 20))))

    out = pl.pallas_call(
        kernel,
        out_shape=jax.ShapeDtypeStruct((nsteps, 1, 1), jnp.float32),
        grid_spec=pltpu.PrefetchScalarGridSpec(
            num_scalar_prefetch=0,
            grid=(nsteps,),
            in_specs=[imgs_spec, illum_spec],
            out_specs=pl.BlockSpec((1, 1, 1), lambda b: (b, 0, 0)),
        ),
        compiler_params=pltpu.CompilerParams(
            dimension_semantics=("parallel",),
            vmem_limit_bytes=vmem_limit,
        ),
    )(imgs, illum)
    return jnp.sum(out)


# ---------------- pure-JAX reference (mirrors the PyTorch semantics) ----------------
def _grad_ref(x, direction):
    if direction == "x":
        g = x[..., :, 1:] - x[..., :, :-1]
        g = jnp.pad(g, ((0, 0), (0, 0), (0, 0), (0, 1)))
    else:
        g = x[..., 1:, :] - x[..., :-1, :]
        g = jnp.pad(g, ((0, 0), (0, 0), (0, 1), (0, 0)))
    return jnp.abs(g)


def _decom_loss_ref(low, high, rl, rh, il, ih):
    il3 = jnp.concatenate([il] * 3, axis=1)
    ih3 = jnp.concatenate([ih] * 3, axis=1)
    l_recon = jnp.mean(jnp.abs(low - il3 * rl)) + jnp.mean(jnp.abs(high - ih3 * rh))
    l_ir = jnp.mean(jnp.abs(rl - rh))
    l1 = jnp.mean(jnp.abs(rh * il3 - low)) + jnp.mean(jnp.abs(rl * ih3 - high))

    gxs = _grad_ref(il, "x") + _grad_ref(ih, "x")
    gys = _grad_ref(il, "y") + _grad_ref(ih, "y")
    mi = jnp.mean(gxs * jnp.exp(-10.0 * gxs) + gys * jnp.exp(-10.0 * gys))

    def mc(i_map, img):
        gray = 0.299 * img[:, 0:1] + 0.587 * img[:, 1:2] + 0.114 * img[:, 2:3]
        xl = jnp.abs(_grad_ref(i_map, "x") / jnp.maximum(_grad_ref(gray, "x"), 0.01))
        yl = jnp.abs(_grad_ref(i_map, "y") / jnp.maximum(_grad_ref(gray, "y"), 0.01))
        return jnp.mean(xl + yl)

    mc_sum = mc(il, low) + mc(ih, high)
    return 1.0 * l_recon + 0.01 * l_ir + 0.1 * mi + 0.001 * l1 + 0.1 * mc_sum


if __name__ == "__main__":
    B, H, W = 2, 16, 16
    key = jax.random.PRNGKey(0)
    ks = jax.random.split(key, 6)
    low_img = jax.random.uniform(ks[0], (B, 3, H, W), jnp.float32)
    high_img = jax.random.uniform(ks[1], (B, 3, H, W), jnp.float32)
    r_low = jax.random.uniform(ks[2], (B, 3, H, W), jnp.float32)
    r_high = jax.random.uniform(ks[3], (B, 3, H, W), jnp.float32)
    i_low = jax.random.uniform(ks[4], (B, 1, H, W), jnp.float32)
    i_high = jax.random.uniform(ks[5], (B, 1, H, W), jnp.float32)

    loss = decom_loss_pallas(low_img, high_img, r_low, r_high, i_low, i_high)
    loss = jax.block_until_ready(loss)

    ref = _decom_loss_ref(low_img, high_img, r_low, r_high, i_low, i_high)
    np.testing.assert_allclose(np.asarray(loss), np.asarray(ref), rtol=1e-4, atol=1e-4)

    print("KERNEL_OK")
</pallas_src>

<mosaic_0001>
module attributes {stable_mosaic.version = 11 : i64} {
  func.func @kernel(%arg0: i32, %arg1: memref<1x12x16x128xf32, #tpu.memory_space<vmem>>, %arg2: memref<1x2x16x128xf32, #tpu.memory_space<vmem>>, %arg3: memref<1x1x1xf32, #tpu.memory_space<vmem>>) attributes {dimension_semantics = [#tpu.dimension_semantics<parallel>], iteration_bounds = array<i64: 2>, scalar_prefetch = 0 : i64, scratch_operands = 0 : i64, tpu.core_type = #tpu.core_type<tc>, window_params = [{transform_indices = @transform_0, window_bounds = array<i64: 1, 12, 16, 128>}, {transform_indices = @transform_1, window_bounds = array<i64: 1, 2, 16, 128>}, {transform_indices = @transform_2, window_bounds = array<i64: 1, 1, 1>}]} {
    %0 = tpu.iota {dimensions = array<i32: 1>} : vector<16x128xi32>
    %1 = tpu.iota {dimensions = array<i32: 0>} : vector<16x128xi32>
    %c15_i32 = arith.constant 15 : i32
    %2 = vector.broadcast %c15_i32 : i32 to vector<16x128xi32>
    %3 = arith.cmpi slt, %0, %2 : vector<16x128xi32>
    %c15_i32_0 = arith.constant 15 : i32
    %4 = vector.broadcast %c15_i32_0 : i32 to vector<16x128xi32>
    %5 = arith.cmpi slt, %1, %4 : vector<16x128xi32>
    %c0 = arith.constant 0 : index
    %c0_1 = arith.constant 0 : index
    %c0_2 = arith.constant 0 : index
    %c0_3 = arith.constant 0 : index
    %6 = vector.load %arg1[%c0, %c0_1, %c0_2, %c0_3] : memref<1x12x16x128xf32, #tpu.memory_space<vmem>>, vector<1x3x16x128xf32>
    %7 = vector.shape_cast %6 : vector<1x3x16x128xf32> to vector<3x16x128xf32>
    %c0_4 = arith.constant 0 : index
    %c3 = arith.constant 3 : index
    %c0_5 = arith.constant 0 : index
    %c0_6 = arith.constant 0 : index
    %8 = vector.load %arg1[%c0_4, %c3, %c0_5, %c0_6] : memref<1x12x16x128xf32, #tpu.memory_space<vmem>>, vector<1x3x16x128xf32>
    %9 = vector.shape_cast %8 : vector<1x3x16x128xf32> to vector<3x16x128xf32>
    %c0_7 = arith.constant 0 : index
    %c6 = arith.constant 6 : index
    %c0_8 = arith.constant 0 : index
    %c0_9 = arith.constant 0 : index
    %10 = vector.load %arg1[%c0_7, %c6, %c0_8, %c0_9] : memref<1x12x16x128xf32, #tpu.memory_space<vmem>>, vector<1x3x16x128xf32>
    %11 = vector.shape_cast %10 : vector<1x3x16x128xf32> to vector<3x16x128xf32>
    %c0_10 = arith.constant 0 : index
    %c9 = arith.constant 9 : index
    %c0_11 = arith.constant 0 : index
    %c0_12 = arith.constant 0 : index
    %12 = vector.load %arg1[%c0_10, %c9, %c0_11, %c0_12] : memref<1x12x16x128xf32, #tpu.memory_space<vmem>>, vector<1x3x16x128xf32>
    %13 = vector.shape_cast %12 : vector<1x3x16x128xf32> to vector<3x16x128xf32>
    %c0_13 = arith.constant 0 : index
    %c0_14 = arith.constant 0 : index
    %c0_15 = arith.constant 0 : index
    %c0_16 = arith.constant 0 : index
    %14 = vector.load %arg2[%c0_13, %c0_14, %c0_15, %c0_16] : memref<1x2x16x128xf32, #tpu.memory_space<vmem>>, vector<1x1x16x128xf32>
    %15 = vector.shape_cast %14 : vector<1x1x16x128xf32> to vector<16x128xf32>
    %c0_17 = arith.constant 0 : index
    %c1 = arith.constant 1 : index
    %c0_18 = arith.constant 0 : index
    %c0_19 = arith.constant 0 : index
    %16 = vector.load %arg2[%c0_17, %c1, %c0_18, %c0_19] : memref<1x2x16x128xf32, #tpu.memory_space<vmem>>, vector<1x1x16x128xf32>
    %17 = vector.shape_cast %16 : vector<1x1x16x128xf32> to vector<16x128xf32>
    %18 = vector.shape_cast %15 : vector<16x128xf32> to vector<1x16x128xf32>
    %19 = vector.broadcast %18 : vector<1x16x128xf32> to vector<3x16x128xf32>
    %20 = arith.mulf %19, %11 : vector<3x16x128xf32>
    %21 = arith.subf %7, %20 : vector<3x16x128xf32>
    %22 = math.absf %21 : vector<3x16x128xf32>
    %23 = vector.shape_cast %17 : vector<16x128xf32> to vector<1x16x128xf32>
    %24 = vector.broadcast %23 : vector<1x16x128xf32> to vector<3x16x128xf32>
    %25 = arith.mulf %24, %13 : vector<3x16x128xf32>
    %26 = arith.subf %9, %25 : vector<3x16x128xf32>
    %27 = math.absf %26 : vector<3x16x128xf32>
    %28 = arith.addf %22, %27 : vector<3x16x128xf32>
    %29 = arith.subf %11, %13 : vector<3x16x128xf32>
    %30 = math.absf %29 : vector<3x16x128xf32>
    %cst = arith.constant 0.00999999977 : f32
    %31 = vector.broadcast %cst : f32 to vector<3x16x128xf32>
    %32 = arith.mulf %31, %30 : vector<3x16x128xf32>
    %33 = arith.addf %28, %32 : vector<3x16x128xf32>
    %34 = vector.shape_cast %15 : vector<16x128xf32> to vector<1x16x128xf32>
    %35 = vector.broadcast %34 : vector<1x16x128xf32> to vector<3x16x128xf32>
    %36 = arith.mulf %13, %35 : vector<3x16x128xf32>
    %37 = arith.subf %36, %7 : vector<3x16x128xf32>
    %38 = math.absf %37 : vector<3x16x128xf32>
    %39 = vector.shape_cast %17 : vector<16x128xf32> to vector<1x16x128xf32>
    %40 = vector.broadcast %39 : vector<1x16x128xf32> to vector<3x16x128xf32>
    %41 = arith.mulf %11, %40 : vector<3x16x128xf32>
    %42 = arith.subf %41, %9 : vector<3x16x128xf32>
    %43 = math.absf %42 : vector<3x16x128xf32>
    %44 = arith.addf %38, %43 : vector<3x16x128xf32>
    %cst_20 = arith.constant 1.000000e-03 : f32
    %45 = vector.broadcast %cst_20 : f32 to vector<3x16x128xf32>
    %46 = arith.mulf %45, %44 : vector<3x16x128xf32>
    %47 = arith.addf %33, %46 : vector<3x16x128xf32>
    %48 = vector.shape_cast %47 : vector<3x16x128xf32> to vector<1x3x16x128xf32>
    %cst_21 = arith.constant dense<0.000000e+00> : vector<1xf32>
    %49 = vector.multi_reduction <add>, %48, %cst_21 [1, 2, 3] : vector<1x3x16x128xf32> to vector<1xf32>
    %50 = vector.shape_cast %49 : vector<1xf32> to vector<1x1x1x1xf32>
    %51 = vector.extract %50[0, 0, 0, 0] : f32 from vector<1x1x1x1xf32>
    %cst_22 = arith.constant 0.000000e+00 : f32
    %52 = arith.addf %cst_22, %51 : f32
    %53 = vector.extract_strided_slice %7 {offsets = [0, 0, 0], sizes = [1, 16, 128], strides = [1, 1, 1]} : vector<3x16x128xf32> to vector<1x16x128xf32>
    %54 = vector.shape_cast %53 : vector<1x16x128xf32> to vector<16x128xf32>
    %cst_23 = arith.constant 2.990000e-01 : f32
    %55 = vector.broadcast %cst_23 : f32 to vector<16x128xf32>
    %56 = arith.mulf %55, %54 : vector<16x128xf32>
    %57 = vector.extract_strided_slice %7 {offsets = [1, 0, 0], sizes = [1, 16, 128], strides = [1, 1, 1]} : vector<3x16x128xf32> to vector<1x16x128xf32>
    %58 = vector.shape_cast %57 : vector<1x16x128xf32> to vector<16x128xf32>
    %cst_24 = arith.constant 5.870000e-01 : f32
    %59 = vector.broadcast %cst_24 : f32 to vector<16x128xf32>
    %60 = arith.mulf %59, %58 : vector<16x128xf32>
    %61 = arith.addf %56, %60 : vector<16x128xf32>
    %62 = vector.extract_strided_slice %7 {offsets = [2, 0, 0], sizes = [1, 16, 128], strides = [1, 1, 1]} : vector<3x16x128xf32> to vector<1x16x128xf32>
    %63 = vector.shape_cast %62 : vector<1x16x128xf32> to vector<16x128xf32>
    %cst_25 = arith.constant 1.140000e-01 : f32
    %64 = vector.broadcast %cst_25 : f32 to vector<16x128xf32>
    %65 = arith.mulf %64, %63 : vector<16x128xf32>
    %66 = arith.addf %61, %65 : vector<16x128xf32>
    %67 = vector.extract_strided_slice %9 {offsets = [0, 0, 0], sizes = [1, 16, 128], strides = [1, 1, 1]} : vector<3x16x128xf32> to vector<1x16x128xf32>
    %68 = vector.shape_cast %67 : vector<1x16x128xf32> to vector<16x128xf32>
    %cst_26 = arith.constant 2.990000e-01 : f32
    %69 = vector.broadcast %cst_26 : f32 to vector<16x128xf32>
    %70 = arith.mulf %69, %68 : vector<16x128xf32>
    %71 = vector.extract_strided_slice %9 {offsets = [1, 0, 0], sizes = [1, 16, 128], strides = [1, 1, 1]} : vector<3x16x128xf32> to vector<1x16x128xf32>
    %72 = vector.shape_cast %71 : vector<1x16x128xf32> to vector<16x128xf32>
    %cst_27 = arith.constant 5.870000e-01 : f32
    %73 = vector.broadcast %cst_27 : f32 to vector<16x128xf32>
    %74 = arith.mulf %73, %72 : vector<16x128xf32>
    %75 = arith.addf %70, %74 : vector<16x128xf32>
    %76 = vector.extract_strided_slice %9 {offsets = [2, 0, 0], sizes = [1, 16, 128], strides = [1, 1, 1]} : vector<3x16x128xf32> to vector<1x16x128xf32>
    %77 = vector.shape_cast %76 : vector<1x16x128xf32> to vector<16x128xf32>
    %cst_28 = arith.constant 1.140000e-01 : f32
    %78 = vector.broadcast %cst_28 : f32 to vector<16x128xf32>
    %79 = arith.mulf %78, %77 : vector<16x128xf32>
    %80 = arith.addf %75, %79 : vector<16x128xf32>
    %c127_i32 = arith.constant 127 : i32
    %81 = tpu.dynamic_rotate %15 by %c127_i32 dim 1 : vector<16x128xf32>, i32 -> vector<16x128xf32>
    %82 = arith.subf %81, %15 : vector<16x128xf32>
    %cst_29 = arith.constant 0.000000e+00 : f32
    %83 = vector.broadcast %cst_29 : f32 to vector<16x128xf32>
    %84 = arith.select %3, %82, %83 : vector<16x128xi1>, vector<16x128xf32>
    %85 = math.absf %84 : vector<16x128xf32>
    %c127_i32_30 = arith.constant 127 : i32
    %86 = tpu.dynamic_rotate %17 by %c127_i32_30 dim 1 : vector<16x128xf32>, i32 -> vector<16x128xf32>
    %87 = arith.subf %86, %17 : vector<16x128xf32>
    %cst_31 = arith.constant 0.000000e+00 : f32
    %88 = vector.broadcast %cst_31 : f32 to vector<16x128xf32>
    %89 = arith.select %3, %87, %88 : vector<16x128xi1>, vector<16x128xf32>
    %90 = math.absf %89 : vector<16x128xf32>
    %91 = arith.addf %85, %90 : vector<16x128xf32>
    %cst_32 = arith.constant -1.000000e+01 : f32
    %92 = vector.broadcast %cst_32 : f32 to vector<16x128xf32>
    %93 = arith.mulf %92, %91 : vector<16x128xf32>
    %94 = math.exp %93 : vector<16x128xf32>
    %95 = arith.mulf %91, %94 : vector<16x128xf32>
    %c127_i32_33 = arith.constant 127 : i32
    %96 = tpu.dynamic_rotate %66 by %c127_i32_33 dim 1 : vector<16x128xf32>, i32 -> vector<16x128xf32>
    %97 = arith.subf %96, %66 : vector<16x128xf32>
    %cst_34 = arith.constant 0.000000e+00 : f32
    %98 = vector.broadcast %cst_34 : f32 to vector<16x128xf32>
    %99 = arith.select %3, %97, %98 : vector<16x128xi1>, vector<16x128xf32>
    %100 = math.absf %99 : vector<16x128xf32>
    %cst_35 = arith.constant 0.00999999977 : f32
    %101 = vector.broadcast %cst_35 : f32 to vector<16x128xf32>
    %102 = arith.maximumf %100, %101 : vector<16x128xf32>
    %103 = tpu.reciprocal %102 : vector<16x128xf32> -> vector<16x128xf32>
    %104 = arith.mulf %85, %103 : vector<16x128xf32>
    %c127_i32_36 = arith.constant 127 : i32
    %105 = tpu.dynamic_rotate %80 by %c127_i32_36 dim 1 : vector<16x128xf32>, i32 -> vector<16x128xf32>
    %106 = arith.subf %105, %80 : vector<16x128xf32>
    %cst_37 = arith.constant 0.000000e+00 : f32
    %107 = vector.broadcast %cst_37 : f32 to vector<16x128xf32>
    %108 = arith.select %3, %106, %107 : vector<16x128xi1>, vector<16x128xf32>
    %109 = math.absf %108 : vector<16x128xf32>
    %cst_38 = arith.constant 0.00999999977 : f32
    %110 = vector.broadcast %cst_38 : f32 to vector<16x128xf32>
    %111 = arith.maximumf %109, %110 : vector<16x128xf32>
    %112 = tpu.reciprocal %111 : vector<16x128xf32> -> vector<16x128xf32>
    %113 = arith.mulf %90, %112 : vector<16x128xf32>
    %114 = arith.addf %104, %113 : vector<16x128xf32>
    %115 = arith.addf %95, %114 : vector<16x128xf32>
    %116 = vector.shape_cast %115 : vector<16x128xf32> to vector<1x16x128xf32>
    %cst_39 = arith.constant dense<0.000000e+00> : vector<1xf32>
    %117 = vector.multi_reduction <add>, %116, %cst_39 [1, 2] : vector<1x16x128xf32> to vector<1xf32>
    %118 = vector.shape_cast %117 : vector<1xf32> to vector<1x1x1xf32>
    %119 = vector.extract %118[0, 0, 0] : f32 from vector<1x1x1xf32>
    %cst_40 = arith.constant 0.000000e+00 : f32
    %120 = arith.addf %cst_40, %119 : f32
    %c15_i32_41 = arith.constant 15 : i32
    %121 = tpu.dynamic_rotate %15 by %c15_i32_41 dim 0 : vector<16x128xf32>, i32 -> vector<16x128xf32>
    %122 = arith.subf %121, %15 : vector<16x128xf32>
    %cst_42 = arith.constant 0.000000e+00 : f32
    %123 = vector.broadcast %cst_42 : f32 to vector<16x128xf32>
    %124 = arith.select %5, %122, %123 : vector<16x128xi1>, vector<16x128xf32>
    %125 = math.absf %124 : vector<16x128xf32>
    %c15_i32_43 = arith.constant 15 : i32
    %126 = tpu.dynamic_rotate %17 by %c15_i32_43 dim 0 : vector<16x128xf32>, i32 -> vector<16x128xf32>
    %127 = arith.subf %126, %17 : vector<16x128xf32>
    %cst_44 = arith.constant 0.000000e+00 : f32
    %128 = vector.broadcast %cst_44 : f32 to vector<16x128xf32>
    %129 = arith.select %5, %127, %128 : vector<16x128xi1>, vector<16x128xf32>
    %130 = math.absf %129 : vector<16x128xf32>
    %131 = arith.addf %125, %130 : vector<16x128xf32>
    %cst_45 = arith.constant -1.000000e+01 : f32
    %132 = vector.broadcast %cst_45 : f32 to vector<16x128xf32>
    %133 = arith.mulf %132, %131 : vector<16x128xf32>
    %134 = math.exp %133 : vector<16x128xf32>
    %135 = arith.mulf %131, %134 : vector<16x128xf32>
    %c15_i32_46 = arith.constant 15 : i32
    %136 = tpu.dynamic_rotate %66 by %c15_i32_46 dim 0 : vector<16x128xf32>, i32 -> vector<16x128xf32>
    %137 = arith.subf %136, %66 : vector<16x128xf32>
    %cst_47 = arith.constant 0.000000e+00 : f32
    %138 = vector.broadcast %cst_47 : f32 to vector<16x128xf32>
    %139 = arith.select %5, %137, %138 : vector<16x128xi1>, vector<16x128xf32>
    %140 = math.absf %139 : vector<16x128xf32>
    %cst_48 = arith.constant 0.00999999977 : f32
    %141 = vector.broadcast %cst_48 : f32 to vector<16x128xf32>
    %142 = arith.maximumf %140, %141 : vector<16x128xf32>
    %143 = tpu.reciprocal %142 : vector<16x128xf32> -> vector<16x128xf32>
    %144 = arith.mulf %125, %143 : vector<16x128xf32>
    %c15_i32_49 = arith.constant 15 : i32
    %145 = tpu.dynamic_rotate %80 by %c15_i32_49 dim 0 : vector<16x128xf32>, i32 -> vector<16x128xf32>
    %146 = arith.subf %145, %80 : vector<16x128xf32>
    %cst_50 = arith.constant 0.000000e+00 : f32
    %147 = vector.broadcast %cst_50 : f32 to vector<16x128xf32>
    %148 = arith.select %5, %146, %147 : vector<16x128xi1>, vector<16x128xf32>
    %149 = math.absf %148 : vector<16x128xf32>
    %cst_51 = arith.constant 0.00999999977 : f32
    %150 = vector.broadcast %cst_51 : f32 to vector<16x128xf32>
    %151 = arith.maximumf %149, %150 : vector<16x128xf32>
    %152 = tpu.reciprocal %151 : vector<16x128xf32> -> vector<16x128xf32>
    %153 = arith.mulf %130, %152 : vector<16x128xf32>
    %154 = arith.addf %144, %153 : vector<16x128xf32>
    %155 = arith.addf %135, %154 : vector<16x128xf32>
    %156 = vector.shape_cast %155 : vector<16x128xf32> to vector<1x16x128xf32>
    %cst_52 = arith.constant dense<0.000000e+00> : vector<1xf32>
    %157 = vector.multi_reduction <add>, %156, %cst_52 [1, 2] : vector<1x16x128xf32> to vector<1xf32>
    %158 = vector.shape_cast %157 : vector<1xf32> to vector<1x1x1xf32>
    %159 = vector.extract %158[0, 0, 0] : f32 from vector<1x1x1xf32>
    %160 = arith.addf %120, %159 : f32
    %cst_53 = arith.constant 6.51041686E-4 : f32
    %161 = arith.mulf %52, %cst_53 : f32
    %cst_54 = arith.constant 1.95312503E-4 : f32
    %162 = arith.mulf %160, %cst_54 : f32
    %163 = arith.addf %161, %162 : f32
    %cst_55 = arith.constant 0.000000e+00 : f32
    %164 = vector.broadcast %cst_55 : f32 to vector<1x1x1xf32>
    %165 = vector.broadcast %163 : f32 to vector<1x1x1xf32>
    %166 = arith.addf %164, %165 : vector<1x1x1xf32>
    %c0_56 = arith.constant 0 : index
    %c0_57 = arith.constant 0 : index
    %c0_58 = arith.constant 0 : index
    %167 = vector.load %arg3[%c0_56, %c0_57, %c0_58] : memref<1x1x1xf32, #tpu.memory_space<vmem>>, vector<1x1x1xf32>
    tpu.vector_store %arg3[%c0_56, %c0_57, %c0_58], %166 {strides = array<i32>} : memref<1x1x1xf32, #tpu.memory_space<vmem>>, vector<1x1x1xf32>,
    return
  }
  func.func @transform_0(%arg0: i32) -> (i32, i32, i32, i32) {
    %c0_i32 = arith.constant 0 : i32
    %c0_i32_0 = arith.constant 0 : i32
    %c0_i32_1 = arith.constant 0 : i32
    %c0_i32_2 = arith.constant 0 : i32
    return %arg0, %c0_i32, %c0_i32_0, %c0_i32_1 : i32, i32, i32, i32
  }
  func.func @transform_1(%arg0: i32) -> (i32, i32, i32, i32) {
    %c0_i32 = arith.constant 0 : i32
    %c0_i32_0 = arith.constant 0 : i32
    %c0_i32_1 = arith.constant 0 : i32
    %c0_i32_2 = arith.constant 0 : i32
    return %arg0, %c0_i32, %c0_i32_0, %c0_i32_1 : i32, i32, i32, i32
  }
  func.func @transform_2(%arg0: i32) -> (i32, i32, i32) {
    %c0_i32 = arith.constant 0 : i32
    %c0_i32_0 = arith.constant 0 : i32
    %c0_i32_1 = arith.constant 0 : i32
    return %arg0, %c0_i32, %c0_i32_0 : i32, i32, i32
  }
}

</mosaic_0001>

<bundles_post_ra>
// kernel: tpu_custom_call.1
= control target key start
LH: loop header
LB: loop body
LE: loop exit
PB: predicated region body
PF: predicated region fallthrough
CT: control target
= control target key end

     0   :  { %7 = vsyncpa [#allocation3], 0  ;;  %s1344_s0 = inlined_call_operand.hbm [shape: f32[2,12,16,128], index: 0, kind: input, shape index: {}]   ;;  %s1345_s1 = inlined_call_operand.hbm [shape: f32[2,2,16,128], index: 1, kind: input, shape index: {}]   ;;  %s1346_s2 = inlined_call_operand.vmem [shape: f32[2,1,1], index: 2, kind: output, shape index: {}]  }
   0x1   :  { %9 = vsyncpa [#allocation3 + $0x1], 0 }
   0x2   :  { %10 = vsyncpa [#allocation5], 0 }
   0x3   :  { %12 = vsyncpa [#allocation5 + $0x1], 0  ;;  %s871_s9 = smov 0   ;;  %s873_s10 = smov 0  }
   0x4   :  { %s875_s11 = smov 0   ;;  %s877_s12 = smov 0  }
   0x5 LB: > { %s890_s13 = sadd.s32 4294967295, %s849_s12   ;;  %s893_s14 = sadd.s32 1, %s849_s12   ;;  %s849_s12 = sphi %s877_s12, %s1390_s12   ;;  %s845_s11 = sphi %s875_s11, %s1389_s11   ;;  %s841_s10 = sphi %s873_s10, %s1388_s10   ;;  %s837_s9 = sphi %s871_s9, %s1387_s9  }
   0x6   : > { %s22_s15 = ssub.s32 %s849_s12, %s893_s14  ;;  %s25_s16 = sadd.s32 1, %s845_s11 }
   0x7   : > { %p23_p0 = scmp.eq.s32.totalorder %s22_s15, 0  ;;  %p32_p1 = scmp.ne.s32.totalorder %s845_s11, %s841_s10 }
   0x8   : > { %p33_p2 = scmp.eq.s32.totalorder %s849_s12, 0  ;;  %p38_p3 = scmp.ne.s32.totalorder %s841_s10, %s837_s9 }
   0x9   : > { %s903_s17 = scalar_select %p23_p0, %s845_s11, %s25_s16  }
   0xa   : > { %p34_p4 = por %p33_p2, %p32_p1  ;;  %p39_p5 = scmp.eq.s32.totalorder %s890_s13, 0 }
   0xb   : > { %p691_p6 = scmp.lt.s32.totalorder %s849_s12, 2  ;;  %s912_s19 = sand.u32 1, %s845_s11  }
   0xc   : > { %p907_p7 = por %p39_p5, %p38_p3  ;;  %s671_s20 = smul.u32 192, %s912_s19 }
   0xd   : > { %s672_s21 = smul.u32 3072, %s849_s12  ;;  %p916_p8 = pnand %p691_p6, %p34_p4 }
   0xe   : > { %s1356_s18 = scalar_select %p907_p7, 1, 0 }
   0xf   : > { %s923_s25 = scalar_lea.hbm %s1344_s0, %s672_s21  ;;  %s118_s26 = scalar_lea.vmem [#allocation2], %s671_s20 }
  0x10   : > { %s125_s27 = sshll.u32 %s118_s26, 4  ;;  %s115_s28 = scalar_lea.sflag [#allocation3], %s912_s19  ;;  %s925_s27 = int_to_ptr.vmem [resolvable:$true] %s125_s27 }
  0x11   : > { %s751_s29 = scalar_lea.hbm %s923_s25, 3072  ;;  %p753_p11 = pneg %p916_p8 }
  0x12   : > { %p752_p10 = scmp.ne.s32.totalorder %s923_s25, %s751_s29  ;;  %s756_s4 = scalar_lea.hbm %s1344_s0, 6144 }
  0x13   : > { %p757_p0 = scmp.lt.u32.totalorder %s923_s25, %s1344_s0  ;;  %p758_p1 = scmp.lt.u32.totalorder %s756_s4, %s751_s29 }
  0x14   : > { %p754_p12 = pnand %p753_p11, %p752_p10  ;;  %p760_p3 = scmp.lt.u32.totalorder %s751_s29, %s923_s25 }
  0x15   : > { %p759_p2 = por %p758_p1, %p757_p0 }
  0x16   : > { %p755_p13 = pneg %p754_p12 }
  0x17   : > { %p761_p4 = por %p760_p3, %p759_p2 }
  0x19   : > { %p762_p5 = pnand %p761_p4, %p755_p13 }
  0x1b   : > { %765 = shalt.err (!%p762_p5)
}
  0x1c   : > { %s766_s7 = scalar_lea.vmem %s925_s27, 3072  ;;  %s851_s8 = smov [#allocation2]  }
  0x1d   : > { %p767_p6 = scmp.ne.s32.totalorder %s925_s27, %s766_s7  ;;  %s771_s9 = sshll.u32 %s851_s8, 4  ;;  %s772_s9 = int_to_ptr.vmem [resolvable:$false] %s771_s9 }
  0x1e   : > { %s773_s15 = scalar_lea.vmem %s772_s9, 6144  ;;  %p774_p9 = scmp.lt.s32.totalorder %s925_s27, %s772_s9 }
  0x1f   : > { %p769_p10 = pnand %p767_p6, %p753_p11  ;;  %p775_p0 = scmp.lt.s32.totalorder %s773_s15, %s766_s7 }
  0x21   : > { %p770_p12 = pneg %p769_p10  ;;  %p776_p1 = por %p775_p0, %p774_p9 }
  0x23   : > { %p777_p2 = pnand %p776_p1, %p770_p12 }
  0x25   : > { %780 = shalt.err (!%p777_p2)
}
  0x26   : > { %s852_s16 = smov 128   ;;  %s853_s20 = smov 8  }
  0x27   : > { %687 = dma.hbm_to_vmem [thread:$0]  (!%p916_p8), %s923_s25, 3072, %s925_s27, %s115_s28, %s852_s16, %s852_s16, %s853_s20  }
  0x28   : > { %p154_p9 = scmp.lt.s32.totalorder %s849_s12, 3  ;;  %s643_s21 = sshll.u32 %s912_s19, 5 }
  0x29   : > { %s670_s23 = sshll.u32 %s849_s12, 9  ;;  %p1358_p13 = scmp.ge.s32.totalorder %s849_s12, 1 }
  0x2a   : > { %s971_s30 = scalar_lea.hbm %s1345_s1, %s670_s23  ;;  %s139_s3 = scalar_lea.vmem [#allocation4], %s643_s21 }
  0x2b   : > { %p964_p3 = pnand %p1358_p13, %p154_p9  ;;  %s146_s4 = sshll.u32 %s139_s3, 4  ;;  %s973_s4 = int_to_ptr.vmem [resolvable:$true] %s146_s4 }
  0x2c   : > { %s136_s25 = scalar_lea.sflag [#allocation5], %s912_s19  ;;  %s781_s27 = scalar_lea.hbm %s971_s30, 512 }
  0x2d   : > { %p782_p4 = scmp.ne.s32.totalorder %s971_s30, %s781_s27  ;;  %s786_s5 = scalar_lea.hbm %s1345_s1, 1024 }
  0x2e   : > { %p787_p10 = scmp.lt.u32.totalorder %s971_s30, %s1345_s1  ;;  %p788_p12 = scmp.lt.u32.totalorder %s786_s5, %s781_s27 }
  0x2f   : > { %p784_p5 = pnand %p782_p4, %p753_p11  ;;  %p790_p1 = scmp.lt.u32.totalorder %s781_s27, %s971_s30 }
  0x30   : > { %p789_p0 = por %p788_p12, %p787_p10 }
  0x31   : > { %p785_p6 = pneg %p784_p5 }
  0x32   : > { %p791_p2 = por %p790_p1, %p789_p0 }
  0x34   : > { %p792_p9 = pnand %p791_p2, %p785_p6 }
  0x36   : > { %795 = shalt.err (!%p792_p9)
}
  0x37   : > { %s796_s8 = scalar_lea.vmem %s973_s4, 512  ;;  %s854_s9 = smov [#allocation4]  }
  0x38   : > { %p797_p13 = scmp.ne.s32.totalorder %s973_s4, %s796_s8  ;;  %s801_s15 = sshll.u32 %s854_s9, 4  ;;  %s802_s15 = int_to_ptr.vmem [resolvable:$false] %s801_s15 }
  0x39   : > { %s803_s21 = scalar_lea.vmem %s802_s15, 1024  ;;  %p804_p7 = scmp.lt.s32.totalorder %s973_s4, %s802_s15 }
  0x3a   : > { %p799_p4 = pnand %p797_p13, %p753_p11  ;;  %p805_p10 = scmp.lt.s32.totalorder %s803_s21, %s796_s8 }
  0x3c   : > { %p800_p5 = pneg %p799_p4  ;;  %p806_p12 = por %p805_p10, %p804_p7 }
  0x3e   : > { %p807_p0 = pnand %p806_p12, %p800_p5 }
  0x40   : > { %810 = shalt.err (!%p807_p0)
}
  0x41   : > { %690 = dma.hbm_to_vmem [thread:$0]  (!%p916_p8), %s971_s30, 512, %s973_s4, %s136_s25, %s852_s16, %s852_s16, %s853_s20  }
  0x42   : > { %158 = sbr.rel (%p964_p3) target bundleno = 452 (0x1c4), region = 28 }
  0x49   : > { %s160_s23 = sand.u32 1, %s841_s10   ;;  %p1360_p7 = scmp.ne.s32.totalorder %s1356_s18, 0 }
  0x4a   : > { %s673_s26 = smul.u32 192, %s160_s23  ;;  %s161_s29 = scalar_lea.sflag [#allocation3], %s160_s23 }
  0x4c   : > { %s1007_s3 = scalar_lea.vmem [#allocation2], %s673_s26 }
  0x4d   : > { %828 = dma.done.wait (%p1360_p7), %s161_s29, 3072  }
  0x4e   : > { %830 = vsyncadd (%p1360_p7), %s161_s29, 4294964224  ;;  %s647_s19 = sshll.u32 %s160_s23, 5  ;;  %s170_s22 = scalar_lea.sflag [#allocation5], %s160_s23 }
  0x4f   : > { %s173_s27 = scalar_lea.vmem [#allocation4], %s647_s19 }
  0x50   : > { %832 = dma.done.wait (%p1360_p7), %s170_s22, 512  }
  0x51   : > { %834 = vsyncadd (%p1360_p7), %s170_s22, 4294966784  ;;  %v1348_v0 = vlaneseq  ;;  %v1020_v2 = vld [vmem:[%s173_s27 + $0x10] sm:$0xff]  ;;  %v1022_v3 = vld [vmem:[%s173_s27] sm:$0xff]  ;;  %s855_s16 = smov 127   ;;  %p197_p8 = scmp.lt.s32.totalorder %s890_s13, 1  ;;  %vm555_vm3 = vcmask 0  }
  0x52   : > { %v1024_v4 = vld [vmem:[%s173_s27 + $0x18] sm:$0xff]  ;;  %405 = vrot.lane.b32.xlu1 %v1020_v2, %s855_s16  ;;  %395 = vrot.lane.b32.xlu0 %v1022_v3, %s855_s16  ;;  %v1030_v5 = vld [vmem:[%s173_s27 + $0x8] sm:$0xff] }
  0x53   : > { %v1018_v1 = vshrl.u32 %v1348_v0, 7  ;;  %v1033_v6 = vld [vmem:[%s1007_s3 + $0x8] sm:$0xff]  ;;  %v1041_v10 = vld [vmem:[%s1007_s3 + $0x18] sm:$0xff]  ;;  %v1059_v19 = vld [vmem:[%s1007_s3] sm:$0xff]  ;;  %s1392_s13 = smov (!%p197_p8, %s890_s13), 1 }
  0x54   : > { %v1044_v11 = vld [vmem:[%s1007_s3 + $0x28] sm:$0xff]  ;;  %v376_v13 = vmul.f32 0.299, %v1033_v6  ;;  %v1052_v15 = vld [vmem:[%s1007_s3 + $0x98] sm:$0xff]  ;;  %v378_v17 = vmul.f32 0.587, %v1041_v10  ;;  %s199_s5 = scalar_lea.vmem %s1346_s2, %s1392_s13 }
  0x55   : > { %v1036_v7 = vadd.s32 8, %v1018_v1  ;;  %v1047_v12 = vld [vmem:[%s1007_s3 + $0x68] sm:$0xff]  ;;  %v382_v18 = vmul.f32 0.114, %v1044_v11  ;;  %v1063_v20 = vmul.f32 %v1052_v15, %v1030_v5  ;;  %v1066_v21 = vld [vmem:[%s1007_s3 + $0x10] sm:$0xff]  ;;  %v1069_v22 = vld [vmem:[%s1007_s3 + $0x20] sm:$0xff]  ;;  %v259_v25 = vmul.f32 %v1024_v4, %v1052_v15 }
  0x56   : > { %v241_v16 = vmul.f32 %v1047_v12, %v1030_v5  ;;  %v1072_v23 = vld [vmem:[%s1007_s3 + $0x60] sm:$0xff]  ;;  %v375_v24 = vmul.f32 0.299, %v1059_v19  ;;  %vm474_vm0 = vcmp.lt.s32.totalorder %v1018_v1, 7  ;;  %407 = vrot.lane.b32.xlu1 %v1024_v4, %s855_s16  ;;  %397 = vrot.lane.b32.xlu0 %v1030_v5, %s855_s16  ;;  %v380_v27 = vadd.f32 %v378_v17, %v376_v13  ;;  %v1085_v29 = vld [vmem:[%s1007_s3 + $0x90] sm:$0xff] }
  0x57   : > { %v240_v30 = vmul.f32 %v1072_v23, %v1022_v3  ;;  %v377_v31 = vmul.f32 0.587, %v1066_v21  ;;  %v1091_v32 = vld [vmem:[%s1007_s3 + $0x38] sm:$0xff]  ;;  %v1095_v33 = vmul.f32 %v1085_v29, %v1022_v3  ;;  %v381_v34 = vmul.f32 0.114, %v1069_v22  ;;  %v1099_v35 = vld [vmem:[%s1007_s3 + $0x48] sm:$0xff] }
  0x58   : > { %v247_v28 = vsub.f32 %v1033_v6, %v241_v16  ;;  %v265_v36 = vsub.f32 %v1091_v32, %v259_v25  ;;  %v1104_v37 = vmul.f32 %v1024_v4, %v1047_v12  ;;  %v1106_v38 = vadd.f32 %v382_v18, %v380_v27  ;;  %v1111_v41 = vld [vmem:[%s1007_s3 + $0x58] sm:$0xff]  ;;  %v1114_v42 = vld [vmem:[%s1007_s3 + $0x30] sm:$0xff]  ;;  %v1125_v48 = vld [vmem:[%s1007_s3 + $0x40] sm:$0xff] }
  0x59   : > { %v379_v40 = vadd.f32 %v377_v31, %v375_v24  ;;  %v246_v45 = vsub.f32 %v1059_v19, %v240_v30  ;;  %v386_v47 = vmul.f32 0.299, %v1091_v32  ;;  %v1128_v49 = vld [vmem:[%s1007_s3 + $0x50] sm:$0xff]  ;;  %v388_v54 = vmul.f32 0.587, %v1099_v35  ;;  %v1142_v55 = vld [vmem:[%s1007_s3 + $0x78] sm:$0xff] }
  0x5a   : > { %1361 = vst [vmem:[#allocation8_spill] sm:$0xff] %v1106_v38  ;;  %v1108_v39 = vand.u32 2147483647, %v247_v28  ;;  %v1131_v50 = vld [vmem:[%s1007_s3 + $0x70] sm:$0xff]  ;;  %427 = vrot.lane.b32.xlu1 %v1106_v38, %s855_s16  ;;  %v504_v51 = vrot.slane %v1106_v38, 1  ;;  %v258_v57 = vmul.f32 %v1020_v2, %v1085_v29  ;;  %v1149_v58 = vmul.f32 %v1020_v2, %v1072_v23  ;;  %v1158_v13 = vld [vmem:[%s1007_s3 + $0x80] sm:$0xff] }
  0x5b   : > { %v1136_v52 = vadd.f32 %v381_v34, %v379_v40  ;;  %v1138_v53 = vand.u32 2147483647, %v265_v36  ;;  %v392_v56 = vmul.f32 0.114, %v1111_v41  ;;  %v385_v59 = vmul.f32 0.299, %v1114_v42 }
  0x5c   : > { %v390_v61 = vadd.f32 %v388_v54, %v386_v47  ;;  %v387_v62 = vmul.f32 0.587, %v1125_v48  ;;  %v391_v63 = vmul.f32 0.114, %v1128_v49  ;;  %v252_v16 = vand.u32 2147483647, %v246_v45 }
  0x5d   : > { %1362 = vst [vmem:[#allocation9_spill] sm:$0xff] %v1136_v52  ;;  %425 = vrot.lane.b32.xlu0 %v1136_v52, %s855_s16  ;;  %v503_v60 = vrot.slane %v1136_v52, 1  ;;  %v1163_v18 = vld [vmem:[%s1007_s3 + $0x88] sm:$0xff]  ;;  %v242_v24 = vmul.f32 %v1131_v50, %v1022_v3  ;;  %v243_v25 = vmul.f32 %v1142_v55, %v1030_v5  ;;  %v264_v30 = vsub.f32 %v1114_v42, %v258_v57  ;;  %v662_v34 = vld [vmem:[%s1007_s3 + $0xa0] sm:$0xff] }
  0x5e   : > { %v1171_v28 = vadd.f32 %v392_v56, %v390_v61  ;;  %v389_v31 = vadd.f32 %v387_v62, %v385_v59  ;;  %v663_v47 = vld [vmem:[%s1007_s3 + $0xa8] sm:$0xff]  ;;  %v244_v54 = vmul.f32 %v1158_v13, %v1022_v3  ;;  %v664_v59 = vld [vmem:[%s1007_s3 + $0xb0] sm:$0xff]  ;;  %v665_v62 = vld [vmem:[%s1007_s3 + $0xb8] sm:$0xff]  ;;  %v260_v9 = vmul.f32 %v1020_v2, %v662_v34 }
  0x5f   : > { %v505_v27 = vsel %vm474_vm0, %v503_v60, %v504_v51  ;;  %v1177_v36 = vsel %vm474_vm0, %v504_v51, %v503_v60  ;;  %v245_v51 = vmul.f32 %v1163_v18, %v1030_v5  ;;  %v248_v60 = vsub.f32 %v1066_v21, %v242_v24 }
  0x60   : > { %1363 = vst [vmem:[#allocation10_spill] sm:$0xff] %v1171_v28  ;;  %v507_v40 = vsub.f32 %v505_v27, %v1136_v52  ;;  %v520_v56 = vrot.slane %v1171_v28, 1  ;;  %443 = vrot.lane.b32.xlu1 %v1171_v28, %s855_s16  ;;  %v1188_v57 = vadd.f32 %v391_v63, %v389_v31  ;;  %v249_v27 = vsub.f32 %v1041_v10, %v243_v25 }
  0x61   : > { %v250_v0 = vsub.f32 %v1069_v22, %v244_v54  ;;  %v251_v31 = vsub.f32 %v1044_v11, %v245_v51  ;;  %v261_v24 = vmul.f32 %v1024_v4, %v663_v47  ;;  %v270_v8 = vand.u32 2147483647, %v264_v30 }
  0x62   : > { %1364 = vst [vmem:[#allocation11_spill] sm:$0xff] %v1188_v57  ;;  %v511_v61 = vand.u32 2147483647, %v507_v40  ;;  %v519_v63 = vrot.slane %v1188_v57, 1  ;;  %441 = vrot.lane.b32.xlu0 %v1188_v57, %s855_s16  ;;  %v254_v26 = vand.u32 2147483647, %v248_v60  ;;  %v262_v25 = vmul.f32 %v1020_v2, %v664_v59 }
  0x63   : > { %v255_v17 = vand.u32 2147483647, %v249_v27  ;;  %v263_v45 = vmul.f32 %v1024_v4, %v665_v62  ;;  %v256_v51 = vand.u32 2147483647, %v250_v0  ;;  %v257_v46 = vand.u32 2147483647, %v251_v31 }
  0x64   : > { %v513_v40 = vmax.f32 %v511_v61, 0.01  ;;  %v521_v54 = vsel %vm474_vm0, %v519_v63, %v520_v56  ;;  %v1210_v14 = vsel %vm474_vm0, %v520_v56, %v519_v63  ;;  %v266_v61 = vsub.f32 %v1125_v48, %v260_v9 }
  0x65   : > { %1365 = vst [vmem:[#allocation12_spill] sm:$0xff] %v1210_v14  ;;  %v523_v44 = vsub.f32 %v521_v54, %v1188_v57  ;;  %v267_v30 = vsub.f32 %v1099_v35, %v261_v24  ;;  %v268_v60 = vsub.f32 %v1128_v49, %v262_v25  ;;  %v269_v43 = vsub.f32 %v1111_v41, %v263_v45 }
  0x66   : > { %727 = vrcp.f32 %v513_v40  ;;  %v272_v27 = vand.u32 2147483647, %v266_v61  ;;  %v282_v52 = vsub.f32 %v1072_v23, %v1085_v29  ;;  %v276_v31 = vadd.f32 %v270_v8, %v252_v16 }
  0x67   : > { %v527_v63 = vand.u32 2147483647, %v523_v44  ;;  %v273_v54 = vand.u32 2147483647, %v267_v30  ;;  %v274_v0 = vand.u32 2147483647, %v268_v60  ;;  %v284_v9 = vsub.f32 %v1131_v50, %v662_v34 }
  0x68   : > { %v275_v40 = vand.u32 2147483647, %v269_v43  ;;  %v277_v24 = vadd.f32 %v1138_v53, %v1108_v39  ;;  %v285_v25 = vsub.f32 %v1142_v55, %v663_v47  ;;  %v286_v45 = vsub.f32 %v1158_v13, %v664_v59 }
  0x69   : > { %v529_v57 = vmax.f32 %v527_v63, 0.01  ;;  %v278_v56 = vadd.f32 %v272_v27, %v254_v26  ;;  %v279_v44 = vadd.f32 %v273_v54, %v255_v17  ;;  %v287_v61 = vsub.f32 %v1163_v18, %v665_v62 }
  0x6a   : > { %v280_v28 = vadd.f32 %v274_v0, %v256_v51  ;;  %v288_v23 = vand.u32 2147483647, %v282_v52  ;;  %v1366_v8 = vsub.f32 %v1047_v12, %v1052_v15  ;;  %v290_v16 = vand.u32 2147483647, %v284_v9 }
  0x6b   : > { %v291_v43 = vand.u32 2147483647, %v285_v25  ;;  %v292_v30 = vand.u32 2147483647, %v286_v45  ;;  %v293_v60 = vand.u32 2147483647, %v287_v61  ;;  %v308_v39 = vmul.f32 %v662_v34, %v1022_v3 }
  0x6c   : > { %v289_v29 = vand.u32 2147483647, %v1366_v8  ;;  %v294_v53 = vmul.f32 0.01, %v288_v23  ;;  %v296_v38 = vmul.f32 0.01, %v290_v16  ;;  %v309_v26 = vmul.f32 %v663_v47, %v1030_v5 }
  0x6d   : > { %729 = vrcp.f32 %v529_v57  ;;  %v281_v17 = vadd.f32 %v275_v40, %v257_v46  ;;  %v297_v63 = vmul.f32 0.01, %v291_v43  ;;  %v310_v52 = vmul.f32 %v664_v59, %v1022_v3 }
  0x6e   : > { %v295_v14 = vmul.f32 0.01, %v289_v29  ;;  %v298_v51 = vmul.f32 0.01, %v292_v30  ;;  %v299_v27 = vmul.f32 0.01, %v293_v60  ;;  %v300_v12 = vadd.f32 %v294_v53, %v276_v31 }
  0x6f   : > { %v311_v15 = vmul.f32 %v665_v62, %v1030_v5  ;;  %v302_v9 = vadd.f32 %v296_v38, %v278_v56  ;;  %v303_v34 = vadd.f32 %v297_v63, %v279_v44  ;;  %v314_v25 = vsub.f32 %v308_v39, %v1066_v21 }
  0x70   : > { %v1235_v54 = vpop.eup %727  ;;  %v301_v0 = vadd.f32 %v295_v14, %v277_v24  ;;  %vm207_vm1 = vcmp.lt.s32.totalorder %v1036_v7, 15  ;;  %v315_v47 = vsub.f32 %v309_v26, %v1041_v10  ;;  %v316_v46 = vsub.f32 %v310_v52, %v1069_v22 }
  0x71   : > { %v317_v57 = vsub.f32 %v311_v15, %v1044_v11  ;;  %v1367_v59 = vsub.f32 %v1095_v33, %v1059_v19  ;;  %v1368_v62 = vsub.f32 %v1063_v20, %v1033_v6  ;;  %v320_v38 = vand.u32 2147483647, %v314_v25 }
  0x72   : > { %v326_v21 = vmul.f32 %v1020_v2, %v1131_v50  ;;  %v327_v56 = vmul.f32 %v1024_v4, %v1142_v55  ;;  %v321_v10 = vand.u32 2147483647, %v315_v47  ;;  %v322_v40 = vand.u32 2147483647, %v316_v46 }
  0x73   : > { %v318_v31 = vand.u32 2147483647, %v1367_v59  ;;  %v319_v14 = vand.u32 2147483647, %v1368_v62  ;;  %v323_v22 = vand.u32 2147483647, %v317_v57  ;;  %v328_v11 = vmul.f32 %v1020_v2, %v1158_v13 }
  0x74   : > { %v329_v19 = vmul.f32 %v1024_v4, %v1163_v18  ;;  %v332_v33 = vsub.f32 %v326_v21, %v1125_v48  ;;  %v333_v6 = vsub.f32 %v327_v56, %v1099_v35  ;;  %v1369_v20 = vsub.f32 %v1149_v58, %v1114_v42 }
  0x75   : > { %v334_v24 = vsub.f32 %v328_v11, %v1128_v49  ;;  %v1370_v55 = vsub.f32 %v1104_v37, %v1091_v32  ;;  %v1371_v44 = vrot.slane %v1030_v5, 1  ;;  %v1372_v13 = vrot.slane %v1022_v3, 1  ;;  %v1379_v11 = vld [vmem:[#allocation8_spill] sm:$0xff] }
  0x76   : > { %v336_v50 = vand.u32 2147483647, %v1369_v20  ;;  %v335_v49 = vsub.f32 %v329_v19, %v1111_v41  ;;  %v338_v58 = vand.u32 2147483647, %v332_v33  ;;  %v339_v61 = vand.u32 2147483647, %v333_v6 }
  0x77   : > { %v337_v45 = vand.u32 2147483647, %v1370_v55  ;;  %v475_v18 = vsel %vm474_vm0, %v1372_v13, %v1371_v44  ;;  %v1373_v48 = vmov %v1372_v13  ;;  %v1374_v35 = vmov %v1371_v44  ;;  %v730_v16 = vpop.eup %729  ;;  %v1381_v33 = vld [vmem:[#allocation12_spill] sm:$0xff]  ;;  %v1382_v6 = vld [vmem:[#allocation10_spill] sm:$0xff] }
  0x78   : > { %v476_v42 = vsel %vm474_vm0, %v1374_v35, %v1373_v48  ;;  %v342_v32 = vadd.f32 %v336_v50, %v318_v31  ;;  %v340_v37 = vand.u32 2147483647, %v334_v24  ;;  %v477_v8 = vsub.f32 %v475_v18, %v1022_v3 }
  0x79   : > { %v343_v23 = vadd.f32 %v337_v45, %v319_v14  ;;  %v478_v29 = vsub.f32 %v476_v42, %v1030_v5  ;;  %v341_v43 = vand.u32 2147483647, %v335_v49  ;;  %v344_v30 = vadd.f32 %v338_v58, %v320_v38 }
  0x7a   : > { %v345_v60 = vadd.f32 %v339_v61, %v321_v10  ;;  %v348_v39 = vmul.f32 0.001, %v342_v32  ;;  %v304_v53 = vadd.f32 %v298_v51, %v280_v28  ;;  %v305_v26 = vadd.f32 %v299_v27, %v281_v17 }
  0x7b   : > { %v346_v63 = vadd.f32 %v340_v37, %v322_v40  ;;  %v349_v52 = vmul.f32 0.001, %v343_v23  ;;  %v347_v15 = vadd.f32 %v341_v43, %v323_v22  ;;  %v350_v41 = vmul.f32 0.001, %v344_v30 }
  0x7c   : > { %v351_v25 = vmul.f32 0.001, %v345_v60  ;;  %v354_v47 = vadd.f32 %v348_v39, %v300_v12  ;;  %v480_v59 = vsel %vm207_vm1, %v478_v29, 0.0  ;;  %v1375_v31 = vrot.slane %v1024_v4, 1 }
  0x7d   : > { %v352_v46 = vmul.f32 0.001, %v346_v63  ;;  %v355_v57 = vadd.f32 %v349_v52, %v301_v0  ;;  %v1376_v62 = vrot.slane %v1020_v2, 1  ;;  %v353_v28 = vmul.f32 0.001, %v347_v15 }
  0x7e   : > { %v356_v17 = vadd.f32 %v350_v41, %v302_v9  ;;  %v481_v51 = vand.u32 2147483647, %v477_v8  ;;  %v1378_v38 = vmov %v1375_v31  ;;  %v357_v0 = vadd.f32 %v351_v25, %v303_v34 }
  0x7f   : > { %v485_v14 = vsel %vm474_vm0, %v1376_v62, %v1375_v31  ;;  %v1377_v27 = vmov %v1376_v62  ;;  %v360_v21 = vadd.f32 %v355_v57, %v354_v47  ;;  %v358_v40 = vadd.f32 %v352_v46, %v304_v53 }
  0x80   : > { %v486_v12 = vsel %vm474_vm0, %v1378_v38, %v1377_v27  ;;  %v487_v56 = vsub.f32 %v485_v14, %v1020_v2  ;;  %v482_v22 = vand.u32 2147483647, %v480_v59  ;;  %v1380_v19 = vsub.f32 %v1177_v36, %v1379_v11 }
  0x81   : > { %v488_v10 = vsub.f32 %v486_v12, %v1024_v4  ;;  %v1383_v20 = vsub.f32 %v1381_v33, %v1382_v6  ;;  %v361_v34 = vadd.f32 %v360_v21, %v356_v17  ;;  %v359_v13 = vadd.f32 %v353_v28, %v305_v26  ;;  %v1385_v33 = vld [vmem:[#allocation9_spill] sm:$0xff] }
  0x82   : > { %v510_v9 = vsel %vm207_vm1, %v1380_v19, 0.0  ;;  %v491_v24 = vand.u32 2147483647, %v487_v56  ;;  %v517_v7 = vmul.f32 %v1235_v54, %v481_v51  ;;  %v1384_v46 = vlaneseq }
  0x83   : > { %v526_v1 = vsel %vm207_vm1, %v1383_v20, 0.0  ;;  %v490_v50 = vsel %vm207_vm1, %v488_v10, 0.0  ;;  %v512_v55 = vand.u32 2147483647, %v510_v9  ;;  %v362_v18 = vadd.f32 %v361_v34, %v357_v0 }
  0x84   : > { %v492_v45 = vand.u32 2147483647, %v490_v50  ;;  %v528_v44 = vand.u32 2147483647, %v526_v1  ;;  %v493_v36 = vadd.f32 %v491_v24, %v481_v51  ;;  %v533_v8 = vmul.f32 %v730_v16, %v491_v24 }
  0x85   : > { %v514_v48 = vmax.f32 %v512_v55, 0.01  ;;  %v363_v49 = vadd.f32 %v362_v18, %v358_v40  ;;  %v201_v57 = vand.u32 127, %v1384_v46 }
  0x86   : > { %v494_v35 = vadd.f32 %v492_v45, %v482_v22  ;;  %v530_v42 = vmax.f32 %v528_v44, 0.01  ;;  %v495_v58 = vmul.f32 -10.0, %v493_v36  ;;  %v535_v39 = vadd.f32 %v533_v8, %v517_v7 }
  0x87   : > { %731 = vrcp.f32 %v514_v48  ;;  %v364_v32 = vadd.f32 %v363_v49, %v359_v13  ;;  %vm205_vm2 = vcmp.lt.s32.totalorder %v201_v57, 15 }
  0x88   : > { %v496_v61 = vmul.f32 -10.0, %v494_v35  ;;  %733 = vrcp.f32 %v530_v42  ;;  %v497_v37 = vmul.f32 1.442695, %v495_v58 }
  0x89   : > { %365 = vadd.xlane.f32.xlu0 %v364_v32 }
  0x8a   : > { %v499_v23 = vmul.f32 1.442695, %v496_v61  ;;  %735 = vpow2.f32 %v497_v37 }
  0x8c   : > { %737 = vpow2.f32 %v499_v23 }
  0x91   : > { %v732_v29 = vpop.eup %731 }
  0x92   : > { %v734_v43 = vpop.eup %733  ;;  %v518_v30 = vmul.f32 %v732_v29, %v482_v22 }
  0x93   : > { %v534_v60 = vmul.f32 %v734_v43, %v492_v45 }
  0x94   : > { %v736_v53 = vpop.eup %735 }
  0x95   : > { %v536_v26 = vadd.f32 %v534_v60, %v518_v30  ;;  %v501_v52 = vmul.f32 %v736_v53, %v493_v36  ;;  %v1386_v36 = vld [vmem:[#allocation11_spill] sm:$0xff] }
  0x96   : > { %v738_v63 = vpop.eup %737 }
  0x97   : > { %v502_v15 = vmul.f32 %v738_v63, %v494_v35  ;;  %v537_v41 = vadd.f32 %v535_v39, %v501_v52 }
  0x99   : > { %v538_v25 = vadd.f32 %v536_v26, %v502_v15 }
  0x9b   : > { %v539_v47 = vadd.f32 %v538_v25, %v537_v41 }
  0x9d   : > { %540 = vadd.xlane.f32.xlu0 %v539_v47 }
  0xc4   : > { %v406_v59 = vpop.permute.xlu1 %405  ;;  %v396_v31 = vpop.permute.xlu0 %395 }
  0xc5   : > { %v409_v54 = vsub.f32 %v406_v59, %v1020_v2  ;;  %v399_v16 = vsub.f32 %v396_v31, %v1022_v3 }
  0xc7   : > { %v411_v62 = vsel %vm205_vm2, %v409_v54, 0.0  ;;  %v401_v14 = vsel %vm205_vm2, %v399_v16, 0.0 }
  0xc8   : > { %v408_v28 = vpop.permute.xlu1 %407  ;;  %v398_v17 = vpop.permute.xlu0 %397  ;;  %v413_v38 = vand.u32 2147483647, %v411_v62  ;;  %v403_v12 = vand.u32 2147483647, %v401_v14 }
  0xc9   : > { %v410_v51 = vsub.f32 %v408_v28, %v1024_v4  ;;  %v400_v27 = vsub.f32 %v398_v17, %v1030_v5 }
  0xca   : > { %v415_v19 = vadd.f32 %v413_v38, %v403_v12 }
  0xcb   : > { %v412_v0 = vsel %vm205_vm2, %v410_v51, 0.0  ;;  %v402_v21 = vsel %vm205_vm2, %v400_v27, 0.0 }
  0xcc   : > { %v414_v56 = vand.u32 2147483647, %v412_v0  ;;  %v404_v2 = vand.u32 2147483647, %v402_v21  ;;  %v428_v10 = vpop.permute.xlu1 %427  ;;  %v417_v24 = vmul.f32 -10.0, %v415_v19 }
  0xcd   : > { %v430_v3 = vsub.f32 %v428_v10, %v1379_v11 }
  0xce   : > { %v416_v40 = vadd.f32 %v414_v56, %v404_v2  ;;  %v419_v42 = vmul.f32 1.442695, %v417_v24 }
  0xcf   : > { %v426_v22 = vpop.permute.xlu0 %425  ;;  %v432_v9 = vsel %vm205_vm2, %v430_v3, 0.0 }
  0xd0   : > { %v429_v4 = vsub.f32 %v426_v22, %v1385_v33  ;;  %v418_v20 = vmul.f32 -10.0, %v416_v40  ;;  %v434_v5 = vand.u32 2147483647, %v432_v9 }
  0xd2   : > { %v431_v1 = vsel %vm205_vm2, %v429_v4, 0.0  ;;  %v444_v50 = vpop.permute.xlu1 %443  ;;  %v421_v55 = vmul.f32 1.442695, %v418_v20  ;;  %v436_v44 = vmax.f32 %v434_v5, 0.01 }
  0xd3   : > { %v433_v34 = vand.u32 2147483647, %v431_v1  ;;  %v446_v45 = vsub.f32 %v444_v50, %v1382_v6 }
  0xd4   : > { %v442_v13 = vpop.permute.xlu0 %441  ;;  %739 = vpow2.f32 %v421_v55 }
  0xd5   : > { %v435_v11 = vmax.f32 %v433_v34, 0.01  ;;  %v448_v18 = vsel %vm205_vm2, %v446_v45, 0.0  ;;  %v445_v48 = vsub.f32 %v442_v13, %v1386_v36  ;;  %741 = vrcp.f32 %v436_v44 }
  0xd6   : > { %v450_v35 = vand.u32 2147483647, %v448_v18 }
  0xd7   : > { %v447_v49 = vsel %vm205_vm2, %v445_v48, 0.0  ;;  %743 = vrcp.f32 %v435_v11 }
  0xd8   : > { %v452_v58 = vmax.f32 %v450_v35, 0.01  ;;  %v449_v61 = vand.u32 2147483647, %v447_v49 }
  0xda   : > { %745 = vrcp.f32 %v452_v58  ;;  %v451_v32 = vmax.f32 %v449_v61, 0.01 }
  0xdb   : > { %747 = vpow2.f32 %v419_v42 }
  0xdc   : > { %749 = vrcp.f32 %v451_v32 }
  0xde   : > { %v740_v6 = vpop.eup %739 }
  0xdf   : > { %v742_v37 = vpop.eup %741  ;;  %v424_v60 = vmul.f32 %v740_v6, %v416_v40 }
  0xe0   : > { %v440_v29 = vmul.f32 %v742_v37, %v404_v2 }
  0xe1   : > { %v744_v23 = vpop.eup %743 }
  0xe2   : > { %v439_v39 = vmul.f32 %v744_v23, %v403_v12 }
  0xe4   : > { %v746_v7 = vpop.eup %745 }
  0xe5   : > { %v748_v8 = vpop.eup %747  ;;  %v456_v43 = vmul.f32 %v746_v7, %v414_v56 }
  0xe6   : > { %v750_v30 = vpop.eup %749  ;;  %v423_v63 = vmul.f32 %v748_v8, %v415_v19 }
  0xe7   : > { %v455_v53 = vmul.f32 %v750_v30, %v413_v38  ;;  %v458_v26 = vadd.f32 %v456_v43, %v440_v29 }
  0xe9   : > { %v457_v52 = vadd.f32 %v455_v53, %v439_v39  ;;  %v460_v15 = vadd.f32 %v458_v26, %v424_v60 }
  0xeb   : > { %v459_v41 = vadd.f32 %v457_v52, %v423_v63 }
  0xed   : > { %v461_v25 = vadd.f32 %v460_v15, %v459_v41 }
  0xef   : > { %462 = vadd.xlane.f32.xlu1 %v461_v25 }
 0x116   : > { %v366_v47 = vpop.xlane.xlu0 %365 }
 0x117   : > { %v367_v46 = vrot.slane %v366_v47, 4 }
 0x119   : > { %v368_v57 = vadd.f32 %v367_v46, %v366_v47 }
 0x11b   : > { %v369_v59 = vrot.slane %v368_v57, 2 }
 0x11d   : > { %v370_v31 = vadd.f32 %v369_v59, %v368_v57 }
 0x11f   : > { %v371_v54 = vrot.slane %v370_v31, 1 }
 0x121   : > { %v372_v16 = vadd.f32 %v371_v54, %v370_v31 }
 0x123   : > { %674 = vpush %v372_v16 }
 0x12a   : > { %v541_v62 = vpop.xlane.xlu0 %540 }
 0x12b   : > { %v542_v14 = vrot.slane %v541_v62, 4 }
 0x12d   : > { %v543_v28 = vadd.f32 %v542_v14, %v541_v62 }
 0x12f   : > { %v544_v17 = vrot.slane %v543_v28, 2 }
 0x131   : > { %v545_v12 = vadd.f32 %v544_v17, %v543_v28 }
 0x133   : > { %v546_v56 = vrot.slane %v545_v12, 1 }
 0x135   : > { %v547_v3 = vadd.f32 %v546_v56, %v545_v12 }
 0x154   : > { %s675_s18 = spop %674 }
 0x155   : > { %s550_s4 = smul.f32 0.0006510417, %s675_s18 }
 0x17c   : > { %v463_v51 = vpop.xlane.xlu1 %462 }
 0x17d   : > { %v464_v27 = vrot.slane %v463_v51, 4 }
 0x17f   : > { %v465_v38 = vadd.f32 %v464_v27, %v463_v51 }
 0x181   : > { %v466_v0 = vrot.slane %v465_v38, 2 }
 0x183   : > { %v467_v21 = vadd.f32 %v466_v0, %v465_v38 }
 0x185   : > { %v468_v2 = vrot.slane %v467_v21, 1 }
 0x187   : > { %v469_v10 = vadd.f32 %v468_v2, %v467_v21 }
 0x189   : > { %676 = vpush %v469_v10 }
 0x18a   : > { %678 = vpush %v547_v3 }
 0x1ba   : > { %s677_s20 = spop %676 }
 0x1bb   : > { %s679_s24 = spop %678 }
 0x1bc   : > { %s549_s30 = sadd.f32 %s679_s24, %s677_s20 }
 0x1be   : > { %s551_s25 = smul.f32 0.0001953125, %s549_s30 }
 0x1c0   : > { %s552_s6 = sadd.f32 %s551_s25, %s550_s4 }
 0x1c2   : > { %v553_v40 = vstv %s552_s6 }
 0x1c3   : > { %556 = vst.msk [vmem:[%s199_s5] sm:$0x1] %vm555_vm3, %v553_v40 }
 0x1c4 PF: > { %p15_p11 = scmp.ge.s32.totalorder %s893_s14, 4   ;;  %s1387_s9 = smov %s841_s10 }
 0x1c5   : > { %s1388_s10 = smov %s845_s11  ;;  %s1389_s11 = smov %s903_s17 }
 0x1c6   : > { %s1390_s12 = smov %s893_s14  ;;  %17 = sbr.rel (!%p15_p11) target bundleno = 5 (0x5), region = 85 }
 0x1cd   :  { %574 = vsyncpa [#allocation3], 1 }
 0x1ce   :  { %576 = vsyncpa [#allocation3 + $0x1], 1 }
 0x1cf   :  { %577 = vsyncpa [#allocation5], 1 }
 0x1d0   :  { %579 = vsyncpa [#allocation5 + $0x1], 1 }

</bundles_post_ra>
